<compile_context>
chip_gen: v7x
topology: tpu7x:2x2x1
jax: 0.10.0
libtpu: 0.0.40
codegen_flags: <defaults>
</compile_context>

<pallas_src>
import functools

import jax
import jax.numpy as jnp
from jax.experimental import pallas as pl
from jax.experimental.pallas import tpu as pltpu


def _round_up(x, m):
    return (x + m - 1) // m * m


def _lenet300_kernel(x_ref, w1_ref, b1_ref, w2_ref, b2_ref,
                     w3_ref, b3_ref, w4_ref, b4_ref, o_ref):
    """Fused MLP forward for one batch tile: 3x (Linear + ReLU) + final Linear.

    Matmul inputs are bf16, accumulation / bias / ReLU are f32.
    """
    x = x_ref[...]                                                   # (TILE_B, Din) bf16

    h = jnp.dot(x, w1_ref[...], preferred_element_type=jnp.float32) + b1_ref[...]
    h = jnp.maximum(h, 0.0).astype(jnp.bfloat16)                     # relu1

    h = jnp.dot(h, w2_ref[...], preferred_element_type=jnp.float32) + b2_ref[...]
    h = jnp.maximum(h, 0.0).astype(jnp.bfloat16)                     # relu2

    h = jnp.dot(h, w3_ref[...], preferred_element_type=jnp.float32) + b3_ref[...]
    h = jnp.maximum(h, 0.0).astype(jnp.bfloat16)                     # relu3

    o_ref[...] = (jnp.dot(h, w4_ref[...], preferred_element_type=jnp.float32)
                  + b4_ref[...]).astype(o_ref.dtype)
    # TODO(synk): PyTorch module also stashes intermediate activations in
    # self.activations; only the final output is returned here.


def init_params(key, input_dim, output_dim):
    """Unpadded f32 params mimicking nn.Linear init (uniform(+-1/sqrt(fan_in))).

    Weights are stored transposed relative to PyTorch: shape (in, out);
    y = x @ W + b is identical to PyTorch's x @ W_pt.T + b with W = W_pt.T.
    """
    dims = [(input_dim, 300), (300, 200), (200, 100), (100, output_dim)]
    params = []
    for fan_in, fan_out in dims:
        key, kw, kb = jax.random.split(key, 3)
        bound = 1.0 / (fan_in ** 0.5)
        w = jax.random.uniform(kw, (fan_in, fan_out), jnp.float32, -bound, bound)
        bias = jax.random.uniform(kb, (fan_out,), jnp.float32, -bound, bound)
        params.extend([w, bias])
    return tuple(params)


def prepare_params(params):
    """Zero-pad layer widths to lane (128) multiples and cast weights to bf16.

    Padding is exact: extra hidden units see zero weights and zero bias, so
    their post-ReLU activation is 0 and they contribute nothing downstream.
    Biases stay f32 (added on the f32 accumulator).
    """
    w1, b1, w2, b2, w3, b3, w4, b4 = params

    d_in = w1.shape[0]
    d_in_p = _round_up(d_in, 128)
    h1_p = _round_up(w1.shape[1], 128)     # 300 -> 384
    h2_p = _round_up(w2.shape[1], 128)     # 200 -> 256
    h3_p = _round_up(w3.shape[1], 128)     # 100 -> 128
    out_p = _round_up(w4.shape[1], 128)    # 10  -> 128

    def pad_wb(w, b, in_p, out_p):
        wp = jnp.zeros((in_p, out_p), jnp.bfloat16)
        wp = wp.at[:w.shape[0], :w.shape[1]].set(w.astype(jnp.bfloat16))
        bp = jnp.zeros((1, out_p), jnp.float32)
        bp = bp.at[0, :b.shape[-1]].set(b.reshape(-1).astype(jnp.float32))
        return wp, bp

    w1p, b1p = pad_wb(w1, b1, d_in_p, h1_p)
    w2p, b2p = pad_wb(w2, b2, h1_p, h2_p)
    w3p, b3p = pad_wb(w3, b3, h2_p, h3_p)
    w4p, b4p = pad_wb(w4, b4, h3_p, out_p)
    return (w1p, b1p, w2p, b2p, w3p, b3p, w4p, b4p)


@functools.partial(jax.jit, static_argnames=("output_dim",))
def lenet300_forward(x, prepared_params, *, output_dim):
    """x: (B, ...) flattened to (B, input_dim) like torch.flatten(x, 1)."""
    w1p, b1p, w2p, b2p, w3p, b3p, w4p, b4p = prepared_params
    d_in_p = w1p.shape[0]
    out_p = w4p.shape[1]

    b = x.shape[0]
    x2d = x.reshape(b, -1)
    d_in = x2d.shape[1]

    # Batch tiling: cap at 512 (fits v7x's smaller VMEM with 2-deep buffering),
    # round small batches up to a multiple of 8 and run a single tile.
    tile_b = min(512, _round_up(b, 8))
    b_pad = _round_up(b, tile_b)

    # Zero-pad batch rows + feature columns, cast to bf16 (halves x HBM traffic).
    xp = jnp.zeros((b_pad, d_in_p), jnp.bfloat16)
    xp = xp.at[:b, :d_in].set(x2d.astype(jnp.bfloat16))

    grid = (pl.cdiv(b_pad, tile_b),)

    def resident(shape):  # weights/biases: same block every grid step
        return pl.BlockSpec(shape, lambda i: (0, 0))

    in_specs = [
        pl.BlockSpec((tile_b, d_in_p), lambda i: (i, 0)),   # x tile
        resident(w1p.shape), resident(b1p.shape),
        resident(w2p.shape), resident(b2p.shape),
        resident(w3p.shape), resident(b3p.shape),
        resident(w4p.shape), resident(b4p.shape),
    ]
    out_spec = pl.BlockSpec((tile_b, out_p), lambda i: (i, 0))

    h1_p, h2_p, h3_p = w1p.shape[1], w2p.shape[1], w3p.shape[1]
    flops = 2 * b_pad * (d_in_p * h1_p + h1_p * h2_p + h2_p * h3_p + h3_p * out_p)
    weight_bytes = sum(int(p.size) * p.dtype.itemsize
                       for p in (w1p, b1p, w2p, b2p, w3p, b3p, w4p, b4p))
    bytes_accessed = b_pad * d_in_p * 2 + weight_bytes + b_pad * out_p * 4

    out_padded = pl.pallas_call(
        _lenet300_kernel,
        out_shape=jax.ShapeDtypeStruct((b_pad, out_p), jnp.float32),
        grid=grid,
        in_specs=in_specs,
        out_specs=out_spec,
        compiler_params=pltpu.CompilerParams(
            dimension_semantics=("parallel",)),
        cost_estimate=pl.CostEstimate(
            flops=flops, transcendentals=0, bytes_accessed=bytes_accessed),
    )(xp, w1p, b1p, w2p, b2p, w3p, b3p, w4p, b4p)

    return out_padded[:b, :output_dim]


def _reference_forward(x, params):
    """Plain-JAX reference (bf16 matmul inputs, f32 accumulation) for checking."""
    b = x.shape[0]
    h = x.reshape(b, -1).astype(jnp.float32)
    w1, b1, w2, b2, w3, b3, w4, b4 = params

    def lin(h, w, bias):
        return jnp.dot(h.astype(jnp.bfloat16), w.astype(jnp.bfloat16),
                       preferred_element_type=jnp.float32) + bias

    h = jnp.maximum(lin(h, w1, b1), 0.0)
    h = jnp.maximum(lin(h, w2, b2), 0.0)
    h = jnp.maximum(lin(h, w3, b3), 0.0)
    return lin(h, w4, b4)


if __name__ == "__main__":
    key = jax.random.PRNGKey(0)
    k_x, k_p = jax.random.split(key)

    # Small NCHW input, flattened inside forward (batch=2, C=4, H=W=16 -> input_dim=1024).
    batch, c, hgt, wid = 2, 4, 16, 16
    input_dim = c * hgt * wid
    output_dim = 10

    x = jax.random.normal(k_x, (batch, c, hgt, wid), dtype=jnp.float32)
    params = init_params(k_p, input_dim, output_dim)
    prepared = prepare_params(params)

    out = lenet300_forward(x, prepared, output_dim=output_dim)
    out = jax.block_until_ready(out)

    ref = _reference_forward(x, params)
    assert out.shape == (batch, output_dim), out.shape
    assert jnp.allclose(out, ref, atol=1e-2, rtol=1e-2), \
        f"max abs err = {jnp.max(jnp.abs(out - ref))}"

    print("KERNEL_OK")
</pallas_src>

<mosaic_0001>
module attributes {stable_mosaic.version = 11 : i64} {
  func.func @_lenet300_kernel(%arg0: i32, %arg1: memref<8x1024xbf16, #tpu.memory_space<vmem>>, %arg2: memref<1024x384xbf16, #tpu.memory_space<vmem>>, %arg3: memref<1x384xf32, #tpu.memory_space<vmem>>, %arg4: memref<384x256xbf16, #tpu.memory_space<vmem>>, %arg5: memref<1x256xf32, #tpu.memory_space<vmem>>, %arg6: memref<256x128xbf16, #tpu.memory_space<vmem>>, %arg7: memref<1x128xf32, #tpu.memory_space<vmem>>, %arg8: memref<128x128xbf16, #tpu.memory_space<vmem>>, %arg9: memref<1x128xf32, #tpu.memory_space<vmem>>, %arg10: memref<8x128xf32, #tpu.memory_space<vmem>>) attributes {dimension_semantics = [#tpu.dimension_semantics<parallel>], iteration_bounds = array<i64: 1>, scalar_prefetch = 0 : i64, scratch_operands = 0 : i64, tpu.core_type = #tpu.core_type<tc>, window_params = [{transform_indices = @transform_0, window_bounds = array<i64: 8, 1024>}, {pipeline_mode = #tpu.pipeline_mode<synchronous>, transform_indices = @transform_1, window_bounds = array<i64: 1024, 384>}, {pipeline_mode = #tpu.pipeline_mode<synchronous>, transform_indices = @transform_2, window_bounds = array<i64: 1, 384>}, {pipeline_mode = #tpu.pipeline_mode<synchronous>, transform_indices = @transform_3, window_bounds = array<i64: 384, 256>}, {pipeline_mode = #tpu.pipeline_mode<synchronous>, transform_indices = @transform_4, window_bounds = array<i64: 1, 256>}, {pipeline_mode = #tpu.pipeline_mode<synchronous>, transform_indices = @transform_5, window_bounds = array<i64: 256, 128>}, {pipeline_mode = #tpu.pipeline_mode<synchronous>, transform_indices = @transform_6, window_bounds = array<i64: 1, 128>}, {pipeline_mode = #tpu.pipeline_mode<synchronous>, transform_indices = @transform_7, window_bounds = array<i64: 128, 128>}, {pipeline_mode = #tpu.pipeline_mode<synchronous>, transform_indices = @transform_8, window_bounds = array<i64: 1, 128>}, {transform_indices = @transform_9, window_bounds = array<i64: 8, 128>}]} {
    %c0 = arith.constant 0 : index
    %c0_0 = arith.constant 0 : index
    %0 = vector.load %arg1[%c0, %c0_0] : memref<8x1024xbf16, #tpu.memory_space<vmem>>, vector<8x1024xbf16>
    %c0_1 = arith.constant 0 : index
    %c0_2 = arith.constant 0 : index
    %1 = vector.load %arg2[%c0_1, %c0_2] : memref<1024x384xbf16, #tpu.memory_space<vmem>>, vector<1024x384xbf16>
    %cst = arith.constant dense<0.000000e+00> : vector<8x384xf32>
    %2 = tpu.matmul %0, %1, %cst {dimension_numbers = #tpu.dot_dimension_numbers<[1], [0], [0], [1], [0, 0, 1, 1], [], []>} : vector<8x1024xbf16>, vector<1024x384xbf16>, vector<8x384xf32> -> vector<8x384xf32>
    %c0_3 = arith.constant 0 : index
    %c0_4 = arith.constant 0 : index
    %3 = vector.load %arg3[%c0_3, %c0_4] : memref<1x384xf32, #tpu.memory_space<vmem>>, vector<1x384xf32>
    %4 = vector.broadcast %3 : vector<1x384xf32> to vector<8x384xf32>
    %5 = arith.addf %2, %4 : vector<8x384xf32>
    %cst_5 = arith.constant 0.000000e+00 : f32
    %6 = vector.broadcast %cst_5 : f32 to vector<8x384xf32>
    %7 = arith.maximumf %5, %6 : vector<8x384xf32>
    %8 = arith.truncf %7 : vector<8x384xf32> to vector<8x384xbf16>
    %c0_6 = arith.constant 0 : index
    %c0_7 = arith.constant 0 : index
    %9 = vector.load %arg4[%c0_6, %c0_7] : memref<384x256xbf16, #tpu.memory_space<vmem>>, vector<384x256xbf16>
    %cst_8 = arith.constant dense<0.000000e+00> : vector<8x256xf32>
    %10 = tpu.matmul %8, %9, %cst_8 {dimension_numbers = #tpu.dot_dimension_numbers<[1], [0], [0], [1], [0, 0, 1, 1], [], []>} : vector<8x384xbf16>, vector<384x256xbf16>, vector<8x256xf32> -> vector<8x256xf32>
    %c0_9 = arith.constant 0 : index
    %c0_10 = arith.constant 0 : index
    %11 = vector.load %arg5[%c0_9, %c0_10] : memref<1x256xf32, #tpu.memory_space<vmem>>, vector<1x256xf32>
    %12 = vector.broadcast %11 : vector<1x256xf32> to vector<8x256xf32>
    %13 = arith.addf %10, %12 : vector<8x256xf32>
    %cst_11 = arith.constant 0.000000e+00 : f32
    %14 = vector.broadcast %cst_11 : f32 to vector<8x256xf32>
    %15 = arith.maximumf %13, %14 : vector<8x256xf32>
    %16 = arith.truncf %15 : vector<8x256xf32> to vector<8x256xbf16>
    %c0_12 = arith.constant 0 : index
    %c0_13 = arith.constant 0 : index
    %17 = vector.load %arg6[%c0_12, %c0_13] : memref<256x128xbf16, #tpu.memory_space<vmem>>, vector<256x128xbf16>
    %cst_14 = arith.constant dense<0.000000e+00> : vector<8x128xf32>
    %18 = tpu.matmul %16, %17, %cst_14 {dimension_numbers = #tpu.dot_dimension_numbers<[1], [0], [0], [1], [0, 0, 1, 1], [], []>} : vector<8x256xbf16>, vector<256x128xbf16>, vector<8x128xf32> -> vector<8x128xf32>
    %c0_15 = arith.constant 0 : index
    %c0_16 = arith.constant 0 : index
    %19 = vector.load %arg7[%c0_15, %c0_16] : memref<1x128xf32, #tpu.memory_space<vmem>>, vector<1x128xf32>
    %20 = vector.broadcast %19 : vector<1x128xf32> to vector<8x128xf32>
    %21 = arith.addf %18, %20 : vector<8x128xf32>
    %cst_17 = arith.constant 0.000000e+00 : f32
    %22 = vector.broadcast %cst_17 : f32 to vector<8x128xf32>
    %23 = arith.maximumf %21, %22 : vector<8x128xf32>
    %24 = arith.truncf %23 : vector<8x128xf32> to vector<8x128xbf16>
    %c0_18 = arith.constant 0 : index
    %c0_19 = arith.constant 0 : index
    %25 = vector.load %arg8[%c0_18, %c0_19] : memref<128x128xbf16, #tpu.memory_space<vmem>>, vector<128x128xbf16>
    %cst_20 = arith.constant dense<0.000000e+00> : vector<8x128xf32>
    %26 = tpu.matmul %24, %25, %cst_20 {dimension_numbers = #tpu.dot_dimension_numbers<[1], [0], [0], [1], [0, 0, 1, 1], [], []>} : vector<8x128xbf16>, vector<128x128xbf16>, vector<8x128xf32> -> vector<8x128xf32>
    %c0_21 = arith.constant 0 : index
    %c0_22 = arith.constant 0 : index
    %27 = vector.load %arg9[%c0_21, %c0_22] : memref<1x128xf32, #tpu.memory_space<vmem>>, vector<1x128xf32>
    %28 = vector.broadcast %27 : vector<1x128xf32> to vector<8x128xf32>
    %29 = arith.addf %26, %28 : vector<8x128xf32>
    %c0_23 = arith.constant 0 : index
    %c0_24 = arith.constant 0 : index
    %30 = vector.load %arg10[%c0_23, %c0_24] : memref<8x128xf32, #tpu.memory_space<vmem>>, vector<8x128xf32>
    tpu.vector_store %arg10[%c0_23, %c0_24], %29 {strides = array<i32>} : memref<8x128xf32, #tpu.memory_space<vmem>>, vector<8x128xf32>,
    return
  }
  func.func @transform_0(%arg0: i32) -> (i32, i32) {
    %c0_i32 = arith.constant 0 : i32
    %c0_i32_0 = arith.constant 0 : i32
    return %arg0, %c0_i32 : i32, i32
  }
  func.func @transform_1(%arg0: i32) -> (i32, i32) {
    %c0_i32 = arith.constant 0 : i32
    %c0_i32_0 = arith.constant 0 : i32
    %c0_i32_1 = arith.constant 0 : i32
    return %c0_i32, %c0_i32_0 : i32, i32
  }
  func.func @transform_2(%arg0: i32) -> (i32, i32) {
    %c0_i32 = arith.constant 0 : i32
    %c0_i32_0 = arith.constant 0 : i32
    %c0_i32_1 = arith.constant 0 : i32
    return %c0_i32, %c0_i32_0 : i32, i32
  }
  func.func @transform_3(%arg0: i32) -> (i32, i32) {
    %c0_i32 = arith.constant 0 : i32
    %c0_i32_0 = arith.constant 0 : i32
    %c0_i32_1 = arith.constant 0 : i32
    return %c0_i32, %c0_i32_0 : i32, i32
  }
  func.func @transform_4(%arg0: i32) -> (i32, i32) {
    %c0_i32 = arith.constant 0 : i32
    %c0_i32_0 = arith.constant 0 : i32
    %c0_i32_1 = arith.constant 0 : i32
    return %c0_i32, %c0_i32_0 : i32, i32
  }
  func.func @transform_5(%arg0: i32) -> (i32, i32) {
    %c0_i32 = arith.constant 0 : i32
    %c0_i32_0 = arith.constant 0 : i32
    %c0_i32_1 = arith.constant 0 : i32
    return %c0_i32, %c0_i32_0 : i32, i32
  }
  func.func @transform_6(%arg0: i32) -> (i32, i32) {
    %c0_i32 = arith.constant 0 : i32
    %c0_i32_0 = arith.constant 0 : i32
    %c0_i32_1 = arith.constant 0 : i32
    return %c0_i32, %c0_i32_0 : i32, i32
  }
  func.func @transform_7(%arg0: i32) -> (i32, i32) {
    %c0_i32 = arith.constant 0 : i32
    %c0_i32_0 = arith.constant 0 : i32
    %c0_i32_1 = arith.constant 0 : i32
    return %c0_i32, %c0_i32_0 : i32, i32
  }
  func.func @transform_8(%arg0: i32) -> (i32, i32) {
    %c0_i32 = arith.constant 0 : i32
    %c0_i32_0 = arith.constant 0 : i32
    %c0_i32_1 = arith.constant 0 : i32
    return %c0_i32, %c0_i32_0 : i32, i32
  }
  func.func @transform_9(%arg0: i32) -> (i32, i32) {
    %c0_i32 = arith.constant 0 : i32
    %c0_i32_0 = arith.constant 0 : i32
    return %arg0, %c0_i32 : i32, i32
  }
}

</mosaic_0001>

<bundles_post_ra>
// kernel: lenet300_forward.1
= control target key start
LH: loop header
LB: loop body
LE: loop exit
PB: predicated region body
PF: predicated region fallthrough
CT: control target
= control target key end

     0   :  { %14 = vsyncpa [#allocation3], 0  ;;  %s3468_s0 = inlined_call_operand.vmem [shape: bf16[8,1024], index: 0, kind: input, shape index: {}]   ;;  %s3469_s1 = inlined_call_operand.hbm [shape: bf16[1024,384], index: 1, kind: input, shape index: {}]   ;;  %s3470_s2 = inlined_call_operand.vmem [shape: f32[1,384], index: 2, kind: input, shape index: {}]   ;;  %s3471_s3 = inlined_call_operand.hbm [shape: bf16[384,256], index: 3, kind: input, shape index: {}]   ;;  %s3472_s4 = inlined_call_operand.vmem [shape: f32[1,256], index: 4, kind: input, shape index: {}]   ;;  %s3473_s5 = inlined_call_operand.vmem [shape: bf16[256,128], index: 5, kind: input, shape index: {}]   ;;  %s3474_s6 = inlined_call_operand.vmem [shape: f32[1,128], index: 6, kind: input, shape index: {}]   ;;  %s3475_s7 = inlined_call_operand.vmem [shape: bf16[128,128], index: 7, kind: input, shape index: {}]   ;;  %s3476_s8 = inlined_call_operand.vmem [shape: f32[1,128], index: 8, kind: input, shape index: {}]   ;;  %s3477_s9 = inlined_call_operand.vmem [shape: f32[8,128], index: 9, kind: output, shape index: {}]  }
   0x1   :  { %15 = vsyncpa [#allocation5], 0  ;;  %s3251_s30 = smov [#allocation2]   ;;  %s3203_s13 = scalar_lea.hbm %s3469_s1, 24576 }
   0x2   :  { %s23_s10 = sshll.u32 %s3251_s30, 4  ;;  %p3204_p0 = scmp.ne.s32.totalorder %s3469_s1, %s3203_s13  ;;  %s24_s10 = int_to_ptr.vmem [resolvable:$true] %s23_s10 }
   0x3   :  { %p3207_p1 = scmp.lt.u32.totalorder %s3203_s13, %s3469_s1 }
   0x5   :  { %p3209_p2 = pnand %p3207_p1, %p3204_p0 }
   0x7   :  { %3212 = shalt.err (!%p3209_p2)
}
   0x8   :  { %s3213_s18 = scalar_lea.vmem %s24_s10, 24576  ;;  %p3218_p4 = scmp.lt.s32.totalorder %s24_s10, %s24_s10 }
   0x9   :  { %p3214_p3 = scmp.ne.s32.totalorder %s24_s10, %s3213_s18  ;;  %p3219_p5 = scmp.lt.s32.totalorder %s3213_s18, %s3213_s18 }
   0xb   :  { %p3220_p6 = por %p3219_p5, %p3218_p4 }
   0xd   :  { %p3221_p7 = pnand %p3220_p6, %p3214_p3 }
   0xf   :  { %3224 = shalt.err (!%p3221_p7)
}
  0x10   :  { %s3252_s19 = smov 192   ;;  %s3253_s20 = smov 12  }
  0x11   :  { %29 = dma.hbm_to_vmem [thread:$0]  %s3469_s1, 24576, %s24_s10, [#allocation3], %s3252_s19, %s3252_s19, %s3253_s20  }
  0x12   :  { %s3254_s23 = smov [#allocation4]   ;;  %s3225_s27 = scalar_lea.hbm %s3471_s3, 6144 }
  0x13   :  { %s37_s24 = sshll.u32 %s3254_s23, 4  ;;  %p3226_p8 = scmp.ne.s32.totalorder %s3471_s3, %s3225_s27  ;;  %s38_s24 = int_to_ptr.vmem [resolvable:$true] %s37_s24 }
  0x14   :  { %p3229_p9 = scmp.lt.u32.totalorder %s3225_s27, %s3471_s3 }
  0x16   :  { %p3231_p10 = pnand %p3229_p9, %p3226_p8 }
  0x18   :  { %3234 = shalt.err (!%p3231_p10)
}
  0x19   :  { %s3235_s12 = scalar_lea.vmem %s38_s24, 6144  ;;  %p3240_p12 = scmp.lt.s32.totalorder %s38_s24, %s38_s24 }
  0x1a   :  { %p3236_p11 = scmp.ne.s32.totalorder %s38_s24, %s3235_s12  ;;  %p3241_p13 = scmp.lt.s32.totalorder %s3235_s12, %s3235_s12 }
  0x1c   :  { %p3242_p0 = por %p3241_p13, %p3240_p12 }
  0x1e   :  { %p3243_p1 = pnand %p3242_p0, %p3236_p11 }
  0x20   :  { %3246 = shalt.err (!%p3243_p1)
}
  0x21   :  { %s3255_s1 = smov 128   ;;  %s3256_s10 = smov 8  }
  0x22   :  { %43 = dma.hbm_to_vmem [thread:$0]  %s3471_s3, 6144, %s38_s24, [#allocation5], %s3255_s1, %s3255_s1, %s3256_s10  }
  0x23   :  { %3247 = dma.done.wait [#allocation3], 24576  }
  0x24   :  { %3248 = vsyncadd [#allocation3], 4294942720 }
  0x25   :  { %3249 = dma.done.wait [#allocation5], 6144  }
  0x26   :  { %3250 = vsyncadd [#allocation5], 4294961152  ;;  %v2843_v0 = vld [vmem:[#allocation2 + $0x4] ss:$12 sps:$4 sm:$0xff]   ;;  %v2845_v1 = vld [vmem:[#allocation2] ss:$12 sps:$4 sm:$0xff]  }
  0x27   :  { %1390 = vmatprep.subr.bf16.mxu0 %v2843_v0  ;;  %v2846_v2 = vld [vmem:[#allocation2 + $0x1c] ss:$12 sps:$4 sm:$0xff]   ;;  %v2848_v3 = vld [vmem:[#allocation2 + $0x18] ss:$12 sps:$4 sm:$0xff]   ;;  %v2849_v4 = vld [vmem:[#allocation2 + $0x34] ss:$12 sps:$4 sm:$0xff]  }
  0x28   :  { %1391 = vmatpush1.bf16.msra.mxu0 %v2845_v1  ;;  %v2851_v5 = vld [vmem:[#allocation2 + $0x30] ss:$12 sps:$4 sm:$0xff]   ;;  %v2852_v6 = vld [vmem:[#allocation2 + $0x4c] ss:$12 sps:$4 sm:$0xff]   ;;  %v2854_v7 = vld [vmem:[#allocation2 + $0x48] ss:$12 sps:$4 sm:$0xff]  }
  0x29   :  { %1392 = vmatprep.subr.bf16.mxu0 %v2846_v2  ;;  %v2855_v8 = vld [vmem:[#allocation2 + $0x64] ss:$12 sps:$4 sm:$0xff]   ;;  %v2857_v9 = vld [vmem:[#allocation2 + $0x60] ss:$12 sps:$4 sm:$0xff]   ;;  %v2858_v10 = vld [vmem:[#allocation2 + $0x7c] ss:$12 sps:$4 sm:$0xff]  }
  0x2a   :  { %v2860_v11 = vld [vmem:[#allocation2 + $0x78] ss:$12 sps:$4 sm:$0xff]   ;;  %v2861_v12 = vld [vmem:[#allocation2 + $0x94] ss:$12 sps:$4 sm:$0xff]   ;;  %v2863_v15 = vld [vmem:[#allocation2 + $0x90] ss:$12 sps:$4 sm:$0xff]  }
  0x2b   :  { %v3337_v13 = vld [vmem:[%s3468_s0] sm:$0xff]  ;;  %v2864_v16 = vld [vmem:[#allocation2 + $0xac] ss:$12 sps:$4 sm:$0xff]   ;;  %v2899_v17 = vld [vmem:[#allocation2 + $0xc8] ss:$12 sps:$4 sm:$0xff]   ;;  %vm3259_vm0 = vmmov 0  }
  0x2c   :  { %1393 = vmatpush1.bf16.msra.mxu0 %v2848_v3  ;;  %v2402_v14 = vcombine.high %v3337_v13, %v3337_v13  ;;  %v2900_v18 = vld [vmem:[#allocation2 + $0x8] ss:$12 sps:$4 sm:$0xff]   ;;  %v2867_v20 = vld [vmem:[#allocation2 + $0xc4] ss:$12 sps:$4 sm:$0xff]   ;;  %2675 = vmatprep.subr.bf16.mxu1 %v2899_v17  ;;  %v2904_v21 = vld [vmem:[#allocation2 + $0xe0] ss:$12 sps:$4 sm:$0xff]   ;;  %v2401_v51 = vcombine.low %v3337_v13, %v3337_v13 }
  0x2d   :  { %1394 = vmatprep.subr.bf16.mxu0 %v2849_v4  ;;  %v2866_v19 = vld [vmem:[#allocation2 + $0xa8] ss:$12 sps:$4 sm:$0xff]   ;;  %2676 = vmatpush3.bf16.msra.mxu1 %v2900_v18  ;;  %v2905_v22 = vld [vmem:[#allocation2 + $0x20] ss:$12 sps:$4 sm:$0xff]   ;;  %v2909_v25 = vld [vmem:[#allocation2 + $0xf8] ss:$12 sps:$4 sm:$0xff]  }
  0x2e   :  { %1422 = vmatprep.mubr.bf16.mxu0 %v2402_v14  ;;  %1586 = vmatprep.mubr.bf16.mxu1 %v2402_v14  ;;  %v2869_v23 = vld [vmem:[#allocation2 + $0xc0] ss:$12 sps:$4 sm:$0xff]   ;;  %v2870_v24 = vld [vmem:[#allocation2 + $0xdc] ss:$12 sps:$4 sm:$0xff]   ;;  %v2910_v26 = vld [vmem:[#allocation2 + $0x38] ss:$12 sps:$4 sm:$0xff]  }
  0x2f   :  { %2677 = vmatprep.subr.bf16.mxu1 %v2904_v21  ;;  %v2872_v27 = vld [vmem:[#allocation2 + $0xd8] ss:$12 sps:$4 sm:$0xff]   ;;  %v2873_v28 = vld [vmem:[#allocation2 + $0xf4] ss:$12 sps:$4 sm:$0xff]   ;;  %v2914_v29 = vld [vmem:[#allocation2 + $0x110] ss:$12 sps:$4 sm:$0xff]  }
  0x30   :  { %1395 = vmatpush1.bf16.msra.mxu0 %v2851_v5  ;;  %v2915_v30 = vld [vmem:[#allocation2 + $0x50] ss:$12 sps:$4 sm:$0xff]   ;;  %v2919_v31 = vld [vmem:[#allocation2 + $0x128] ss:$12 sps:$4 sm:$0xff]   ;;  %v2876_v33 = vld [vmem:[#allocation2 + $0x10c] ss:$12 sps:$4 sm:$0xff]  }
  0x31   :  { %1396 = vmatprep.subr.bf16.mxu0 %v2852_v6  ;;  %2678 = vmatpush3.bf16.msra.mxu1 %v2905_v22  ;;  %v2875_v32 = vld [vmem:[#allocation2 + $0xf0] ss:$12 sps:$4 sm:$0xff]   ;;  %v2920_v34 = vld [vmem:[#allocation2 + $0x68] ss:$12 sps:$4 sm:$0xff]   ;;  %v2924_v35 = vld [vmem:[#allocation2 + $0x140] ss:$12 sps:$4 sm:$0xff]  }
  0x32   :  { %2679 = vmatprep.subr.bf16.mxu1 %v2909_v25  ;;  %v2878_v36 = vld [vmem:[#allocation2 + $0x108] ss:$12 sps:$4 sm:$0xff]   ;;  %v2879_v37 = vld [vmem:[#allocation2 + $0x124] ss:$12 sps:$4 sm:$0xff]   ;;  %v2925_v38 = vld [vmem:[#allocation2 + $0x80] ss:$12 sps:$4 sm:$0xff]  }
  0x33   :  { %v2929_v39 = vld [vmem:[#allocation2 + $0x158] ss:$12 sps:$4 sm:$0xff]   ;;  %v2881_v40 = vld [vmem:[#allocation2 + $0x120] ss:$12 sps:$4 sm:$0xff]   ;;  %v2882_v41 = vld [vmem:[#allocation2 + $0x13c] ss:$12 sps:$4 sm:$0xff]  }
  0x34   :  { %1397 = vmatpush1.bf16.msra.mxu0 %v2854_v7  ;;  %v2930_v42 = vld [vmem:[#allocation2 + $0x98] ss:$12 sps:$4 sm:$0xff]   ;;  %v2934_v43 = vld [vmem:[#allocation2 + $0x170] ss:$12 sps:$4 sm:$0xff]   ;;  %v2885_v45 = vld [vmem:[#allocation2 + $0x154] ss:$12 sps:$4 sm:$0xff]  }
  0x35   :  { %1398 = vmatprep.subr.bf16.mxu0 %v2855_v8  ;;  %2680 = vmatpush3.bf16.msra.mxu1 %v2910_v26  ;;  %v2884_v44 = vld [vmem:[#allocation2 + $0x138] ss:$12 sps:$4 sm:$0xff]   ;;  %v2935_v46 = vld [vmem:[#allocation2 + $0xb0] ss:$12 sps:$4 sm:$0xff]   ;;  %v2939_v47 = vld [vmem:[#allocation2 + $0x248] ss:$12 sps:$4 sm:$0xff]  }
  0x36   :  { %2681 = vmatprep.subr.bf16.mxu1 %v2914_v29  ;;  %v2887_v48 = vld [vmem:[#allocation2 + $0x150] ss:$12 sps:$4 sm:$0xff]   ;;  %v2888_v49 = vld [vmem:[#allocation2 + $0x16c] ss:$12 sps:$4 sm:$0xff]   ;;  %v2940_v50 = vld [vmem:[#allocation2 + $0x188] ss:$12 sps:$4 sm:$0xff]  }
  0x37   :  { %v2944_v52 = vld [vmem:[#allocation2 + $0x260] ss:$12 sps:$4 sm:$0xff]   ;;  %v2890_v53 = vld [vmem:[#allocation2 + $0x168] ss:$12 sps:$4 sm:$0xff]   ;;  %v2895_v54 = vld [vmem:[#allocation2 + $0x184] ss:$12 sps:$4 sm:$0xff]  }
  0x38   :  { %1399 = vmatpush1.bf16.msra.mxu0 %v2857_v9  ;;  %v2945_v55 = vld [vmem:[#allocation2 + $0x1a0] ss:$12 sps:$4 sm:$0xff]   ;;  %v2949_v56 = vld [vmem:[#allocation2 + $0x278] ss:$12 sps:$4 sm:$0xff]   ;;  %v2898_v58 = vld [vmem:[#allocation2 + $0x19c] ss:$12 sps:$4 sm:$0xff]  }
  0x39   :  { %1400 = vmatprep.subr.bf16.mxu0 %v2858_v10  ;;  %2682 = vmatpush3.bf16.msra.mxu1 %v2915_v30  ;;  %v2893_v57 = vld [vmem:[#allocation2 + $0x180] ss:$12 sps:$4 sm:$0xff]   ;;  %v2950_v59 = vld [vmem:[#allocation2 + $0x1b8] ss:$12 sps:$4 sm:$0xff]   ;;  %v2954_v60 = vld [vmem:[#allocation2 + $0x290] ss:$12 sps:$4 sm:$0xff]  }
  0x3a   :  { %2683 = vmatprep.subr.bf16.mxu1 %v2919_v31  ;;  %v2896_v61 = vld [vmem:[#allocation2 + $0x198] ss:$12 sps:$4 sm:$0xff]   ;;  %v2903_v62 = vld [vmem:[#allocation2 + $0x1b4] ss:$12 sps:$4 sm:$0xff]   ;;  %v2955_v63 = vld [vmem:[#allocation2 + $0x1d0] ss:$12 sps:$4 sm:$0xff]  }
  0x3b   :  { %v2959_v0 = vld [vmem:[#allocation2 + $0x2a8] ss:$12 sps:$4 sm:$0xff]   ;;  %v2901_v1 = vld [vmem:[#allocation2 + $0x1b0] ss:$12 sps:$4 sm:$0xff]   ;;  %v2908_v2 = vld [vmem:[#allocation2 + $0x1cc] ss:$12 sps:$4 sm:$0xff]  }
  0x3c   :  { %1401 = vmatpush1.bf16.msra.mxu0 %v2860_v11  ;;  %v2960_v3 = vld [vmem:[#allocation2 + $0x1e8] ss:$12 sps:$4 sm:$0xff]   ;;  %v2964_v4 = vld [vmem:[#allocation2 + $0x2c0] ss:$12 sps:$4 sm:$0xff]   ;;  %v2913_v8 = vld [vmem:[#allocation2 + $0x1e4] ss:$12 sps:$4 sm:$0xff]  }
  0x3d   :  { %1402 = vmatprep.subr.bf16.mxu0 %v2861_v12  ;;  %2684 = vmatpush3.bf16.msra.mxu1 %v2920_v34  ;;  %v62_v5 = vld [vmem:[%s3468_s0 + $0x8] sm:$0xff]  ;;  %v2969_v10 = vld [vmem:[#allocation2 + $0x2d8] ss:$12 sps:$4 sm:$0xff]   ;;  %v2976_v14 = vld [vmem:[#allocation2 + $0x2f0] ss:$12 sps:$4 sm:$0xff]  }
  0x3e   :  { %2685 = vmatprep.subr.bf16.mxu1 %v2924_v35  ;;  %v2906_v6 = vld [vmem:[#allocation2 + $0x1c8] ss:$12 sps:$4 sm:$0xff]   ;;  %v2404_v7 = vcombine.high %v62_v5, %v62_v5  ;;  %v2965_v9 = vld [vmem:[#allocation2 + $0x200] ss:$12 sps:$4 sm:$0xff]   ;;  %v2970_v13 = vld [vmem:[#allocation2 + $0x218] ss:$12 sps:$4 sm:$0xff]   ;;  %v3346_v22 = vcombine.low %v62_v5, %v62_v5 }
  0x3f   :  { %v2911_v11 = vld [vmem:[#allocation2 + $0x1e0] ss:$12 sps:$4 sm:$0xff]   ;;  %v2918_v12 = vld [vmem:[#allocation2 + $0x1fc] ss:$12 sps:$4 sm:$0xff]   ;;  %v2933_v25 = vld [vmem:[#allocation2 + $0x244] ss:$12 sps:$4 sm:$0xff]  }
  0x40   :  { %1403 = vmatpush1.bf16.msra.mxu0 %v2863_v15  ;;  %v2916_v15 = vld [vmem:[#allocation2 + $0x1f8] ss:$12 sps:$4 sm:$0xff]   ;;  %v2977_v17 = vld [vmem:[#allocation2 + $0x230] ss:$12 sps:$4 sm:$0xff]   ;;  %v2981_v18 = vld [vmem:[#allocation2 + $0x3c8] ss:$12 sps:$4 sm:$0xff]  }
  0x41   :  { %1404 = vmatprep.subr.bf16.mxu0 %v2864_v16  ;;  %2686 = vmatpush3.bf16.msra.mxu1 %v2925_v38  ;;  %v2923_v16 = vld [vmem:[#allocation2 + $0x214] ss:$12 sps:$4 sm:$0xff]   ;;  %v2938_v29 = vld [vmem:[#allocation2 + $0x25c] ss:$12 sps:$4 sm:$0xff]   ;;  %v2992_v30 = vld [vmem:[#allocation2 + $0x338] ss:$12 sps:$4 sm:$0xff]  }
  0x42   :  { %2687 = vmatprep.subr.bf16.mxu1 %v2929_v39  ;;  %v2982_v21 = vld [vmem:[#allocation2 + $0x308] ss:$12 sps:$4 sm:$0xff]   ;;  %v2987_v26 = vld [vmem:[#allocation2 + $0x320] ss:$12 sps:$4 sm:$0xff]   ;;  %v2996_v31 = vld [vmem:[#allocation2 + $0x410] ss:$12 sps:$4 sm:$0xff]  }
  0x43   :  { %v2997_v34 = vld [vmem:[#allocation2 + $0x350] ss:$12 sps:$4 sm:$0xff]   ;;  %v3001_v35 = vld [vmem:[#allocation2 + $0x428] ss:$12 sps:$4 sm:$0xff]  }
  0x44   :  { %1405 = vmatpush1.bf16.msra.mxu0 %v2866_v19  ;;  %v2921_v19 = vld [vmem:[#allocation2 + $0x210] ss:$12 sps:$4 sm:$0xff]   ;;  %v3002_v38 = vld [vmem:[#allocation2 + $0x368] ss:$12 sps:$4 sm:$0xff]  }
  0x45   :  { %1406 = vmatprep.subr.bf16.mxu0 %v2867_v20  ;;  %2688 = vmatpush3.bf16.msra.mxu1 %v2930_v42  ;;  %v2928_v20 = vld [vmem:[#allocation2 + $0x22c] ss:$12 sps:$4 sm:$0xff]   ;;  %v63_v39 = vld [vmem:[%s3468_s0 + $0x10] sm:$0xff] }
  0x46   :  { %2689 = vmatprep.subr.bf16.mxu1 %v2934_v43  ;;  %v2946_v42 = vld [vmem:[#allocation2 + $0x288] ss:$12 sps:$4 sm:$0xff]   ;;  %v2953_v43 = vld [vmem:[#allocation2 + $0x2a4] ss:$12 sps:$4 sm:$0xff]  }
  0x47   :  { %v2985_v5 = vld [vmem:[#allocation2 + $0x334] ss:$12 sps:$4 sm:$0xff]  }
  0x48   :  { %1407 = vmatpush1.bf16.msra.mxu0 %v2869_v23  ;;  %v2986_v23 = vld [vmem:[#allocation2 + $0x3e0] ss:$12 sps:$4 sm:$0xff]  }
  0x49   :  { %1408 = vmatprep.subr.bf16.mxu0 %v2870_v24  ;;  %2690 = vmatpush3.bf16.msra.mxu1 %v2935_v46  ;;  %v2926_v24 = vld [vmem:[#allocation2 + $0x228] ss:$12 sps:$4 sm:$0xff]   ;;  %v2951_v46 = vld [vmem:[#allocation2 + $0x2a0] ss:$12 sps:$4 sm:$0xff]  }
  0x4a   :  { %2697 = vmatprep.subr.bf16.mxu1 %v2939_v47  ;;  %v2958_v47 = vld [vmem:[#allocation2 + $0x2bc] ss:$12 sps:$4 sm:$0xff]  }
  0x4c   :  { %1409 = vmatpush1.bf16.msra.mxu0 %v2872_v27  ;;  %1587 = vmatmul.mubr.bf16.vlgmr.msra.gmra.mrb[0].mxu1 %v2401_v51  ;;  %v2991_v27 = vld [vmem:[#allocation2 + $0x3f8] ss:$12 sps:$4 sm:$0xff]  }
  0x4d   :  { %1410 = vmatprep.subr.bf16.mxu0 %v2873_v28  ;;  %2698 = vmatpush3.bf16.msra.mxu1 %v2940_v50  ;;  %v2931_v28 = vld [vmem:[#allocation2 + $0x240] ss:$12 sps:$4 sm:$0xff]   ;;  %v2956_v50 = vld [vmem:[#allocation2 + $0x2b8] ss:$12 sps:$4 sm:$0xff]  }
  0x4e   :  { %2699 = vmatprep.subr.bf16.mxu1 %v2944_v52  ;;  %1626 = vmatprep.mubr.bf16.mxu1 %v2404_v7  ;;  %v3017_v52 = vld [vmem:[#allocation2 + $0x3b0] ss:$12 sps:$4 sm:$0xff]  }
  0x50   :  { %1411 = vmatpush1.bf16.msra.mxu0 %v2875_v32  ;;  %v2936_v32 = vld [vmem:[#allocation2 + $0x258] ss:$12 sps:$4 sm:$0xff]  }
  0x51   :  { %1412 = vmatprep.subr.bf16.mxu0 %v2876_v33  ;;  %2700 = vmatpush3.bf16.msra.mxu1 %v2945_v55  ;;  %v2943_v33 = vld [vmem:[#allocation2 + $0x274] ss:$12 sps:$4 sm:$0xff]   ;;  %v2968_v55 = vld [vmem:[#allocation2 + $0x2ec] ss:$12 sps:$4 sm:$0xff]  }
  0x52   :  { %2701 = vmatprep.subr.bf16.mxu1 %v2949_v56  ;;  %v3352_v56 = vcombine.low %v63_v39, %v63_v39 }
  0x54   :  { %1413 = vmatpush1.bf16.msra.mxu0 %v2878_v36  ;;  %v2941_v36 = vld [vmem:[#allocation2 + $0x270] ss:$12 sps:$4 sm:$0xff]  }
  0x55   :  { %1414 = vmatprep.subr.bf16.mxu0 %v2879_v37  ;;  %2702 = vmatpush3.bf16.msra.mxu1 %v2950_v59  ;;  %v2948_v37 = vld [vmem:[#allocation2 + $0x28c] ss:$12 sps:$4 sm:$0xff]   ;;  %v2966_v59 = vld [vmem:[#allocation2 + $0x2e8] ss:$12 sps:$4 sm:$0xff]  }
  0x56   :  { %2703 = vmatprep.subr.bf16.mxu1 %v2954_v60  ;;  %v2975_v60 = vld [vmem:[#allocation2 + $0x304] ss:$12 sps:$4 sm:$0xff]  }
  0x58   :  { %1415 = vmatpush1.bf16.msra.mxu0 %v2881_v40  ;;  %v3006_v40 = vld [vmem:[#allocation2 + $0x440] ss:$12 sps:$4 sm:$0xff]  }
  0x59   :  { %1416 = vmatprep.subr.bf16.mxu0 %v2882_v41  ;;  %2704 = vmatpush3.bf16.msra.mxu1 %v2955_v63  ;;  %v2406_v41 = vcombine.high %v63_v39, %v63_v39  ;;  %v2973_v63 = vld [vmem:[#allocation2 + $0x300] ss:$12 sps:$4 sm:$0xff]   ;;  %v3040_v39 = vld [vmem:[#allocation2 + $0x438] ss:$12 sps:$4 sm:$0xff]  }
  0x5a   :  { %2705 = vmatprep.subr.bf16.mxu1 %v2959_v0  ;;  %v2980_v0 = vld [vmem:[#allocation2 + $0x31c] ss:$12 sps:$4 sm:$0xff]  }
  0x5c   :  { %1417 = vmatpush1.bf16.msra.mxu0 %v2884_v44  ;;  %v3007_v44 = vld [vmem:[#allocation2 + $0x380] ss:$12 sps:$4 sm:$0xff]  }
  0x5d   :  { %1418 = vmatprep.subr.bf16.mxu0 %v2885_v45  ;;  %2706 = vmatpush3.bf16.msra.mxu1 %v2960_v3  ;;  %v3011_v45 = vld [vmem:[#allocation2 + $0x458] ss:$12 sps:$4 sm:$0xff]  }
  0x5e   :  { %2707 = vmatprep.subr.bf16.mxu1 %v2964_v4  ;;  %v64_v3 = vld [vmem:[%s3468_s0 + $0x18] sm:$0xff] }
  0x5f   :  { %v2978_v4 = vld [vmem:[#allocation2 + $0x318] ss:$12 sps:$4 sm:$0xff]  }
  0x60   :  { %1419 = vmatpush1.bf16.msra.mxu0 %v2887_v48  ;;  %v3012_v48 = vld [vmem:[#allocation2 + $0x398] ss:$12 sps:$4 sm:$0xff]  }
  0x61   :  { %1420 = vmatprep.subr.bf16.mxu0 %v2888_v49  ;;  %2708 = vmatpush3.bf16.msra.mxu1 %v2965_v9  ;;  %v3016_v49 = vld [vmem:[#allocation2 + $0x470] ss:$12 sps:$4 sm:$0xff]  }
  0x62   :  { %2709 = vmatprep.subr.bf16.mxu1 %v2969_v10  ;;  %v2983_v9 = vld [vmem:[#allocation2 + $0x330] ss:$12 sps:$4 sm:$0xff]   ;;  %v2990_v10 = vld [vmem:[#allocation2 + $0x34c] ss:$12 sps:$4 sm:$0xff]  }
  0x64   :  { %1421 = vmatpush1.bf16.msra.mxu0 %v2890_v53  ;;  %v3023_v53 = vld [vmem:[#allocation2 + $0x548] ss:$12 sps:$4 sm:$0xff]  }
  0x65   :  { %1431 = vmatprep.subr.bf16.mxu0 %v2895_v54  ;;  %2710 = vmatpush3.bf16.msra.mxu1 %v2970_v13  ;;  %v2961_v54 = vld [vmem:[#allocation2 + $0x2d0] ss:$12 sps:$4 sm:$0xff]   ;;  %v2988_v13 = vld [vmem:[#allocation2 + $0x348] ss:$12 sps:$4 sm:$0xff]  }
  0x66   :  { %2711 = vmatprep.subr.bf16.mxu1 %v2976_v14  ;;  %v2995_v14 = vld [vmem:[#allocation2 + $0x364] ss:$12 sps:$4 sm:$0xff]  }
  0x67   :  { %1423 = vmatmul.mubr.bf16.vlgmr.msra.gmra.mrb[0].mxu0 %v2401_v51  ;;  %v2963_v51 = vld [vmem:[#allocation2 + $0x2d4] ss:$12 sps:$4 sm:$0xff]  }
  0x68   :  { %1432 = vmatpush1.bf16.msra.mxu0 %v2893_v57  ;;  %1463 = vmatprep.mubr.bf16.mxu0 %v2404_v7  ;;  %v3024_v57 = vld [vmem:[#allocation2 + $0x488] ss:$12 sps:$4 sm:$0xff]   ;;  %v3039_v7 = vld [vmem:[#allocation2 + $0x4d0] ss:$12 sps:$4 sm:$0xff]  }
  0x69   :  { %1433 = vmatprep.subr.bf16.mxu0 %v2898_v58  ;;  %2712 = vmatpush3.bf16.msra.mxu1 %v2977_v17  ;;  %v3028_v58 = vld [vmem:[#allocation2 + $0x560] ss:$12 sps:$4 sm:$0xff]  }
  0x6a   :  { %2719 = vmatprep.subr.bf16.mxu1 %v2981_v18  ;;  %v2993_v17 = vld [vmem:[#allocation2 + $0x360] ss:$12 sps:$4 sm:$0xff]   ;;  %v3000_v18 = vld [vmem:[#allocation2 + $0x37c] ss:$12 sps:$4 sm:$0xff]  }
  0x6c   :  { %1434 = vmatpush1.bf16.msra.mxu0 %v2896_v61  ;;  %1627 = vmatmul.mubr.bf16.vlgmr.msra.gmra.mrb[4].mxu1 %v3346_v22  ;;  %v3029_v61 = vld [vmem:[#allocation2 + $0x4a0] ss:$12 sps:$4 sm:$0xff]  }
  0x6d   :  { %1435 = vmatprep.subr.bf16.mxu0 %v2903_v62  ;;  %2720 = vmatpush3.bf16.msra.mxu1 %v2982_v21  ;;  %v3033_v62 = vld [vmem:[#allocation2 + $0x578] ss:$12 sps:$4 sm:$0xff]  }
  0x6e   :  { %2721 = vmatprep.subr.bf16.mxu1 %v2986_v23  ;;  %1666 = vmatprep.mubr.bf16.mxu1 %v2406_v41  ;;  %v2998_v21 = vld [vmem:[#allocation2 + $0x378] ss:$12 sps:$4 sm:$0xff]   ;;  %v3059_v23 = vld [vmem:[#allocation2 + $0x530] ss:$12 sps:$4 sm:$0xff]  }
  0x70   :  { %1436 = vmatpush1.bf16.msra.mxu0 %v2901_v1  ;;  %v3034_v1 = vld [vmem:[#allocation2 + $0x4b8] ss:$12 sps:$4 sm:$0xff]  }
  0x71   :  { %1437 = vmatprep.subr.bf16.mxu0 %v2908_v2  ;;  %2722 = vmatpush3.bf16.msra.mxu1 %v2987_v26  ;;  %v3038_v2 = vld [vmem:[#allocation2 + $0x590] ss:$12 sps:$4 sm:$0xff]   ;;  %v3362_v26 = vcombine.low %v64_v3, %v64_v3 }
  0x72   :  { %2723 = vmatprep.subr.bf16.mxu1 %v2991_v27  ;;  %v3008_v27 = vld [vmem:[#allocation2 + $0x3a8] ss:$12 sps:$4 sm:$0xff]  }
  0x74   :  { %1438 = vmatpush1.bf16.msra.mxu0 %v2906_v6  ;;  %v3359_v6 = vcombine.high %v64_v3, %v64_v3  ;;  %v3092_v3 = vld [vmem:[#allocation2 + $0x588] ss:$12 sps:$4 sm:$0xff]  }
  0x75   :  { %1439 = vmatprep.subr.bf16.mxu0 %v2913_v8  ;;  %2724 = vmatpush3.bf16.msra.mxu1 %v2992_v30  ;;  %v3043_v8 = vld [vmem:[#allocation2 + $0x5a8] ss:$12 sps:$4 sm:$0xff]  }
  0x76   :  { %2725 = vmatprep.subr.bf16.mxu1 %v2996_v31  ;;  %v3020_v30 = vld [vmem:[#allocation2 + $0x3dc] ss:$12 sps:$4 sm:$0xff]   ;;  %v3018_v31 = vld [vmem:[#allocation2 + $0x3d8] ss:$12 sps:$4 sm:$0xff]  }
  0x78   :  { %1440 = vmatpush1.bf16.msra.mxu0 %v2911_v11  ;;  %v3044_v11 = vld [vmem:[#allocation2 + $0x4e8] ss:$12 sps:$4 sm:$0xff]  }
  0x79   :  { %1441 = vmatprep.subr.bf16.mxu0 %v2918_v12  ;;  %2726 = vmatpush3.bf16.msra.mxu1 %v2997_v34  ;;  %v3048_v12 = vld [vmem:[#allocation2 + $0x5c0] ss:$12 sps:$4 sm:$0xff]  }
  0x7a   :  { %2727 = vmatprep.subr.bf16.mxu1 %v3001_v35  ;;  %v3032_v34 = vld [vmem:[#allocation2 + $0x40c] ss:$12 sps:$4 sm:$0xff]   ;;  %v3030_v35 = vld [vmem:[#allocation2 + $0x408] ss:$12 sps:$4 sm:$0xff]  }
  0x7c   :  { %1442 = vmatpush1.bf16.msra.mxu0 %v2916_v15  ;;  %v3049_v15 = vld [vmem:[#allocation2 + $0x500] ss:$12 sps:$4 sm:$0xff]  }
  0x7d   :  { %1443 = vmatprep.subr.bf16.mxu0 %v2923_v16  ;;  %2728 = vmatpush3.bf16.msra.mxu1 %v3002_v38  ;;  %v3053_v16 = vld [vmem:[#allocation2 + $0x5d8] ss:$12 sps:$4 sm:$0xff]   ;;  %v3042_v38 = vld [vmem:[#allocation2 + $0x43c] ss:$12 sps:$4 sm:$0xff]  }
  0x7e   :  { %2729 = vmatprep.subr.bf16.mxu1 %v3006_v40  ;;  %v3047_v40 = vld [vmem:[#allocation2 + $0x454] ss:$12 sps:$4 sm:$0xff]  }
  0x80   :  { %1444 = vmatpush1.bf16.msra.mxu0 %v2921_v19  ;;  %v3054_v19 = vld [vmem:[#allocation2 + $0x518] ss:$12 sps:$4 sm:$0xff]  }
  0x81   :  { %1445 = vmatprep.subr.bf16.mxu0 %v2928_v20  ;;  %2730 = vmatpush3.bf16.msra.mxu1 %v3007_v44  ;;  %v3058_v20 = vld [vmem:[#allocation2 + $0x5f0] ss:$12 sps:$4 sm:$0xff]  }
  0x82   :  { %2731 = vmatprep.subr.bf16.mxu1 %v3011_v45  ;;  %v3057_v44 = vld [vmem:[#allocation2 + $0x484] ss:$12 sps:$4 sm:$0xff]   ;;  %v3055_v45 = vld [vmem:[#allocation2 + $0x480] ss:$12 sps:$4 sm:$0xff]  }
  0x84   :  { %1446 = vmatpush1.bf16.msra.mxu0 %v2926_v24  ;;  %v3003_v24 = vld [vmem:[#allocation2 + $0x390] ss:$12 sps:$4 sm:$0xff]  }
  0x85   :  { %1447 = vmatprep.subr.bf16.mxu0 %v2933_v25  ;;  %2732 = vmatpush3.bf16.msra.mxu1 %v3012_v48  ;;  %v3010_v25 = vld [vmem:[#allocation2 + $0x3ac] ss:$12 sps:$4 sm:$0xff]   ;;  %v3067_v48 = vld [vmem:[#allocation2 + $0x4b4] ss:$12 sps:$4 sm:$0xff]  }
  0x86   :  { %2733 = vmatprep.subr.bf16.mxu1 %v3016_v49  ;;  %v3065_v49 = vld [vmem:[#allocation2 + $0x4b0] ss:$12 sps:$4 sm:$0xff]  }
  0x88   :  { %1448 = vmatpush1.bf16.msra.mxu0 %v2931_v28  ;;  %v3015_v28 = vld [vmem:[#allocation2 + $0x3c4] ss:$12 sps:$4 sm:$0xff]  }
  0x89   :  { %1449 = vmatprep.subr.bf16.mxu0 %v2938_v29  ;;  %2734 = vmatpush3.bf16.msra.mxu1 %v3017_v52  ;;  %v3013_v29 = vld [vmem:[#allocation2 + $0x3c0] ss:$12 sps:$4 sm:$0xff]   ;;  %v3073_v52 = vld [vmem:[#allocation2 + $0x4e4] ss:$12 sps:$4 sm:$0xff]  }
  0x8a   :  { %2741 = vmatprep.subr.bf16.mxu1 %v3023_v53  ;;  %v3071_v53 = vld [vmem:[#allocation2 + $0x4e0] ss:$12 sps:$4 sm:$0xff]  }
  0x8c   :  { %1450 = vmatpush1.bf16.msra.mxu0 %v2936_v32  ;;  %1667 = vmatmul.mubr.bf16.vlgmr.msra.gmra.mrb[8].mxu1 %v3352_v56  ;;  %v3027_v32 = vld [vmem:[#allocation2 + $0x3f4] ss:$12 sps:$4 sm:$0xff]  }
  0x8d   :  { %1451 = vmatprep.subr.bf16.mxu0 %v2943_v33  ;;  %2742 = vmatpush3.bf16.msra.mxu1 %v3024_v57  ;;  %v3025_v33 = vld [vmem:[#allocation2 + $0x3f0] ss:$12 sps:$4 sm:$0xff]  }
  0x8e   :  { %2743 = vmatprep.subr.bf16.mxu1 %v3028_v58  ;;  %1706 = vmatprep.mubr.bf16.mxu1 %v3359_v6  ;;  %v3077_v57 = vld [vmem:[#allocation2 + $0x510] ss:$12 sps:$4 sm:$0xff]   ;;  %v3082_v58 = vld [vmem:[#allocation2 + $0x52c] ss:$12 sps:$4 sm:$0xff]  }
  0x90   :  { %1452 = vmatpush1.bf16.msra.mxu0 %v2941_v36  ;;  %v3037_v36 = vld [vmem:[#allocation2 + $0x424] ss:$12 sps:$4 sm:$0xff]  }
  0x91   :  { %1453 = vmatprep.subr.bf16.mxu0 %v2948_v37  ;;  %2744 = vmatpush3.bf16.msra.mxu1 %v3029_v61  ;;  %v3035_v37 = vld [vmem:[#allocation2 + $0x420] ss:$12 sps:$4 sm:$0xff]  }
  0x92   :  { %2745 = vmatprep.subr.bf16.mxu1 %v3033_v62  ;;  %v3083_v61 = vld [vmem:[#allocation2 + $0x540] ss:$12 sps:$4 sm:$0xff]   ;;  %v3088_v62 = vld [vmem:[#allocation2 + $0x55c] ss:$12 sps:$4 sm:$0xff]  }
  0x94   :  { %1454 = vmatpush1.bf16.msra.mxu0 %v2946_v42  ;;  %v3052_v42 = vld [vmem:[#allocation2 + $0x46c] ss:$12 sps:$4 sm:$0xff]  }
  0x95   :  { %1455 = vmatprep.subr.bf16.mxu0 %v2953_v43  ;;  %2746 = vmatpush3.bf16.msra.mxu1 %v3034_v1  ;;  %v3050_v43 = vld [vmem:[#allocation2 + $0x468] ss:$12 sps:$4 sm:$0xff]   ;;  %v3089_v1 = vld [vmem:[#allocation2 + $0x570] ss:$12 sps:$4 sm:$0xff]  }
  0x96   :  { %2747 = vmatprep.subr.bf16.mxu1 %v3038_v2  ;;  %v3094_v2 = vld [vmem:[#allocation2 + $0x58c] ss:$12 sps:$4 sm:$0xff]  }
  0x98   :  { %1456 = vmatpush1.bf16.msra.mxu0 %v2951_v46  ;;  %v3064_v46 = vld [vmem:[#allocation2 + $0x49c] ss:$12 sps:$4 sm:$0xff]  }
  0x99   :  { %1457 = vmatprep.subr.bf16.mxu0 %v2958_v47  ;;  %2748 = vmatpush3.bf16.msra.mxu1 %v3039_v7  ;;  %v3062_v47 = vld [vmem:[#allocation2 + $0x498] ss:$12 sps:$4 sm:$0xff]  }
  0x9a   :  { %2749 = vmatprep.subr.bf16.mxu1 %v3043_v8  ;;  %v3098_v7 = vld [vmem:[#allocation2 + $0x5b8] ss:$12 sps:$4 sm:$0xff]   ;;  %v3103_v8 = vld [vmem:[#allocation2 + $0x5d4] ss:$12 sps:$4 sm:$0xff]  }
  0x9c   :  { %1458 = vmatpush1.bf16.msra.mxu0 %v2956_v50  ;;  %v3070_v50 = vld [vmem:[#allocation2 + $0x4cc] ss:$12 sps:$4 sm:$0xff]  }
  0x9d   :  { %1459 = vmatprep.subr.bf16.mxu0 %v2963_v51  ;;  %2750 = vmatpush3.bf16.msra.mxu1 %v3044_v11  ;;  %v3068_v51 = vld [vmem:[#allocation2 + $0x4c8] ss:$12 sps:$4 sm:$0xff]   ;;  %v3101_v11 = vld [vmem:[#allocation2 + $0x5d0] ss:$12 sps:$4 sm:$0xff]  }
  0x9e   :  { %2751 = vmatprep.subr.bf16.mxu1 %v3048_v12  ;;  %v3112_v12 = vld [vmem:[#allocation4 + $0x14] ss:$8 sps:$4 sm:$0xff]  }
  0xa0   :  { %1460 = vmatpush1.bf16.msra.mxu0 %v2961_v54  ;;  %v3076_v54 = vld [vmem:[#allocation2 + $0x4fc] ss:$12 sps:$4 sm:$0xff]  }
  0xa1   :  { %1461 = vmatprep.subr.bf16.mxu0 %v2968_v55  ;;  %2752 = vmatpush3.bf16.msra.mxu1 %v3049_v15  ;;  %v3074_v55 = vld [vmem:[#allocation2 + $0x4f8] ss:$12 sps:$4 sm:$0xff]  }
  0xa2   :  { %2753 = vmatprep.subr.bf16.mxu1 %v3053_v16  ;;  %v3115_v15 = vld [vmem:[#allocation4 + $0x24] ss:$8 sps:$4 sm:$0xff]   ;;  %v3104_v16 = vld [vmem:[#allocation2 + $0x5e8] ss:$12 sps:$4 sm:$0xff]  }
  0xa4   :  { %1462 = vmatpush1.bf16.msra.mxu0 %v2966_v59  ;;  %v3080_v59 = vld [vmem:[#allocation2 + $0x528] ss:$12 sps:$4 sm:$0xff]  }
  0xa5   :  { %1472 = vmatprep.subr.bf16.mxu0 %v2975_v60  ;;  %2754 = vmatpush3.bf16.msra.mxu1 %v3054_v19  ;;  %v3085_v60 = vld [vmem:[#allocation2 + $0x544] ss:$12 sps:$4 sm:$0xff]  }
  0xa6   :  { %2755 = vmatprep.subr.bf16.mxu1 %v3058_v20  ;;  %v3116_v19 = vld [vmem:[#allocation4 + $0x30] ss:$8 sps:$4 sm:$0xff]   ;;  %v3121_v20 = vld [vmem:[#allocation4 + $0x44] ss:$8 sps:$4 sm:$0xff]  }
  0xa7   :  { %1464 = vmatmul.mubr.bf16.vlgmr.msra.gmra.mrb[0].mxu0 %v3346_v22  ;;  %v3005_v22 = vld [vmem:[#allocation2 + $0x394] ss:$12 sps:$4 sm:$0xff]  }
  0xa8   :  { %1473 = vmatpush1.bf16.msra.mxu0 %v2973_v63  ;;  %1504 = vmatprep.mubr.bf16.mxu0 %v2406_v41  ;;  %v3045_v41 = vld [vmem:[#allocation2 + $0x450] ss:$12 sps:$4 sm:$0xff]   ;;  %v3086_v63 = vld [vmem:[#allocation2 + $0x558] ss:$12 sps:$4 sm:$0xff]  }
  0xa9   :  { %1474 = vmatprep.subr.bf16.mxu0 %v2980_v0  ;;  %2756 = vmatpush3.bf16.msra.mxu1 %v3059_v23  ;;  %v3091_v0 = vld [vmem:[#allocation2 + $0x574] ss:$12 sps:$4 sm:$0xff]   ;;  %v3122_v23 = vld [vmem:[#allocation4 + $0x50] ss:$8 sps:$4 sm:$0xff]  }
  0xac   :  { %1475 = vmatpush1.bf16.msra.mxu0 %v2978_v4  ;;  %1707 = vmatmul.mubr.bf16.vlgmr.msra.gmra.mrb[12].mxu1 %v3362_v26  ;;  %v3097_v4 = vld [vmem:[#allocation2 + $0x5a4] ss:$12 sps:$4 sm:$0xff]  }
  0xad   :  { %1476 = vmatprep.subr.bf16.mxu0 %v2985_v5  ;;  %v3095_v5 = vld [vmem:[#allocation2 + $0x5a0] ss:$12 sps:$4 sm:$0xff]  }
  0xb0   :  { %1477 = vmatpush1.bf16.msra.mxu0 %v2983_v9  ;;  %v3107_v9 = vld [vmem:[#allocation4] ss:$8 sps:$4 sm:$0xff]  }
  0xb1   :  { %1478 = vmatprep.subr.bf16.mxu0 %v2990_v10  ;;  %v3109_v10 = vld [vmem:[#allocation4 + $0x4] ss:$8 sps:$4 sm:$0xff]  }
  0xb2   :  { %2020 = vmatprep.subr.bf16.mxu1 %v3109_v10 }
  0xb3   :  { %2021 = vmatpush1.bf16.msra.mxu1 %v3107_v9 }
  0xb4   :  { %1479 = vmatpush1.bf16.msra.mxu0 %v2988_v13  ;;  %v3106_v13 = vld [vmem:[#allocation2 + $0x5ec] ss:$12 sps:$4 sm:$0xff]   ;;  %2022 = vmatprep.subr.bf16.mxu1 %v3112_v12 }
  0xb5   :  { %1480 = vmatprep.subr.bf16.mxu0 %v2995_v14  ;;  %v3110_v14 = vld [vmem:[#allocation4 + $0x10] ss:$8 sps:$4 sm:$0xff]  }
  0xb7   :  { %2023 = vmatpush1.bf16.msra.mxu1 %v3110_v14 }
  0xb8   :  { %1481 = vmatpush1.bf16.msra.mxu0 %v2993_v17  ;;  %v3113_v17 = vld [vmem:[#allocation4 + $0x20] ss:$8 sps:$4 sm:$0xff]   ;;  %2024 = vmatprep.subr.bf16.mxu1 %v3115_v15 }
  0xb9   :  { %1482 = vmatprep.subr.bf16.mxu0 %v3000_v18  ;;  %v3118_v18 = vld [vmem:[#allocation4 + $0x34] ss:$8 sps:$4 sm:$0xff]  }
  0xbb   :  { %2025 = vmatpush1.bf16.msra.mxu1 %v3113_v17 }
  0xbc   :  { %1483 = vmatpush1.bf16.msra.mxu0 %v2998_v21  ;;  %2026 = vmatprep.subr.bf16.mxu1 %v3118_v18  ;;  %v3119_v21 = vld [vmem:[#allocation4 + $0x40] ss:$8 sps:$4 sm:$0xff]  }
  0xbd   :  { %1484 = vmatprep.subr.bf16.mxu0 %v3005_v22  ;;  %v3124_v22 = vld [vmem:[#allocation4 + $0x54] ss:$8 sps:$4 sm:$0xff]  }
  0xbf   :  { %2027 = vmatpush1.bf16.msra.mxu1 %v3116_v19 }
  0xc0   :  { %1485 = vmatpush1.bf16.msra.mxu0 %v3003_v24  ;;  %2028 = vmatprep.subr.bf16.mxu1 %v3121_v20  ;;  %v3127_v24 = vld [vmem:[#allocation4 + $0x64] ss:$8 sps:$4 sm:$0xff]  }
  0xc1   :  { %1486 = vmatprep.subr.bf16.mxu0 %v3010_v25  ;;  %v3125_v25 = vld [vmem:[#allocation4 + $0x60] ss:$8 sps:$4 sm:$0xff]  }
  0xc3   :  { %2029 = vmatpush1.bf16.msra.mxu1 %v3119_v21 }
  0xc4   :  { %1487 = vmatpush1.bf16.msra.mxu0 %v3008_v27  ;;  %2030 = vmatprep.subr.bf16.mxu1 %v3124_v22 }
  0xc5   :  { %1488 = vmatprep.subr.bf16.mxu0 %v3015_v28  ;;  %v3130_v28 = vld [vmem:[#allocation4 + $0x74] ss:$8 sps:$4 sm:$0xff]  }
  0xc7   :  { %2031 = vmatpush1.bf16.msra.mxu1 %v3122_v23  ;;  %v3155_v23 = vld [vmem:[#allocation4 + $0x100] ss:$8 sps:$4 sm:$0xff]  }
  0xc8   :  { %1489 = vmatpush1.bf16.msra.mxu0 %v3013_v29  ;;  %2032 = vmatprep.subr.bf16.mxu1 %v3127_v24 }
  0xc9   :  { %1490 = vmatprep.subr.bf16.mxu0 %v3020_v30 }
  0xcb   :  { %2033 = vmatpush1.bf16.msra.mxu1 %v3125_v25  ;;  %v3160_v25 = vld [vmem:[#allocation4 + $0x114] ss:$8 sps:$4 sm:$0xff]  }
  0xcc   :  { %1491 = vmatpush1.bf16.msra.mxu0 %v3018_v31  ;;  %2034 = vmatprep.subr.bf16.mxu1 %v3130_v28  ;;  %v3257_v28 = vmov 0  }
  0xcd   :  { %1492 = vmatprep.subr.bf16.mxu0 %v3027_v32 }
  0xd0   :  { %1493 = vmatpush1.bf16.msra.mxu0 %v3025_v33  ;;  %v3133_v33 = vld [vmem:[#allocation4 + $0x84] ss:$8 sps:$4 sm:$0xff]  }
  0xd1   :  { %1494 = vmatprep.subr.bf16.mxu0 %v3032_v34  ;;  %v3131_v34 = vld [vmem:[#allocation4 + $0x80] ss:$8 sps:$4 sm:$0xff]  }
  0xd4   :  { %1495 = vmatpush1.bf16.msra.mxu0 %v3030_v35  ;;  %v3136_v35 = vld [vmem:[#allocation4 + $0x94] ss:$8 sps:$4 sm:$0xff]  }
  0xd5   :  { %1496 = vmatprep.subr.bf16.mxu0 %v3037_v36  ;;  %v3134_v36 = vld [vmem:[#allocation4 + $0x90] ss:$8 sps:$4 sm:$0xff]  }
  0xd8   :  { %1497 = vmatpush1.bf16.msra.mxu0 %v3035_v37  ;;  %v3139_v37 = vld [vmem:[#allocation4 + $0xa4] ss:$8 sps:$4 sm:$0xff]  }
  0xd9   :  { %1498 = vmatprep.subr.bf16.mxu0 %v3042_v38  ;;  %v3137_v38 = vld [vmem:[#allocation4 + $0xa0] ss:$8 sps:$4 sm:$0xff]  }
  0xdc   :  { %1499 = vmatpush1.bf16.msra.mxu0 %v3040_v39  ;;  %v323_v39 = vlaneseq }
  0xdd   :  { %1500 = vmatprep.subr.bf16.mxu0 %v3047_v40  ;;  %v3142_v40 = vld [vmem:[#allocation4 + $0xb4] ss:$8 sps:$4 sm:$0xff]  }
  0xe0   :  { %1501 = vmatpush1.bf16.msra.mxu0 %v3045_v41  ;;  %v3140_v41 = vld [vmem:[#allocation4 + $0xb0] ss:$8 sps:$4 sm:$0xff]  }
  0xe1   :  { %1502 = vmatprep.subr.bf16.mxu0 %v3052_v42  ;;  %v3368_v42 = vshrl.u32 %v323_v39, 7  ;;  %v3176_v39 = vld [vmem:[#allocation4 + $0x170] ss:$8 sps:$4 sm:$0xff]  }
  0xe3   :  { %v325_v10 = vsub.s32 0, %v3368_v42 }
  0xe4   :  { %1503 = vmatpush1.bf16.msra.mxu0 %v3050_v43  ;;  %v3145_v43 = vld [vmem:[#allocation4 + $0xc4] ss:$8 sps:$4 sm:$0xff]  }
  0xe5   :  { %1513 = vmatprep.subr.bf16.mxu0 %v3057_v44  ;;  %v3143_v44 = vld [vmem:[#allocation4 + $0xc0] ss:$8 sps:$4 sm:$0xff]  }
  0xe7   :  { %1505 = vmatmul.mubr.bf16.vlgmr.msra.gmra.mrb[0].mxu0 %v3352_v56  ;;  %v3079_v56 = vld [vmem:[#allocation2 + $0x514] ss:$12 sps:$4 sm:$0xff]  }
  0xe8   :  { %1514 = vmatpush1.bf16.msra.mxu0 %v3055_v45  ;;  %1545 = vmatprep.mubr.bf16.mxu0 %v3359_v6  ;;  %v3100_v6 = vld [vmem:[#allocation2 + $0x5bc] ss:$12 sps:$4 sm:$0xff]   ;;  %v333_v45 = vsub.s32 2, %v3368_v42 }
  0xe9   :  { %1515 = vmatprep.subr.bf16.mxu0 %v3064_v46  ;;  %v3148_v46 = vld [vmem:[#allocation4 + $0xd4] ss:$8 sps:$4 sm:$0xff]  }
  0xec   :  { %1516 = vmatpush1.bf16.msra.mxu0 %v3062_v47  ;;  %v321_v47 = vld [vmem:[%s3470_s2] sm:$0x7] }
  0xed   :  { %1517 = vmatprep.subr.bf16.mxu0 %v3067_v48  ;;  %v3146_v48 = vld [vmem:[#allocation4 + $0xd0] ss:$8 sps:$4 sm:$0xff]   ;;  %v326_v12 = vrot.slane %v321_v47, %v325_v10 }
  0xf0   :  { %1518 = vmatpush1.bf16.msra.mxu0 %v3065_v49  ;;  %v334_v49 = vrot.slane %v321_v47, %v333_v45  ;;  %v3181_v45 = vld [vmem:[%s3473_s5 + $0x48] sm:$0xff]  }
  0xf1   :  { %1519 = vmatprep.subr.bf16.mxu0 %v3070_v50 }
  0xf4   :  { %1520 = vmatpush1.bf16.msra.mxu0 %v3068_v51 }
  0xf5   :  { %1521 = vmatprep.subr.bf16.mxu0 %v3073_v52 }
  0xf8   :  { %1522 = vmatpush1.bf16.msra.mxu0 %v3071_v53 }
  0xf9   :  { %1523 = vmatprep.subr.bf16.mxu0 %v3076_v54 }
  0xfc   :  { %1524 = vmatpush1.bf16.msra.mxu0 %v3074_v55 }
  0xfd   :  { %1525 = vmatprep.subr.bf16.mxu0 %v3079_v56 }
 0x100   :  { %1526 = vmatpush1.bf16.msra.mxu0 %v3077_v57 }
 0x101   :  { %1527 = vmatprep.subr.bf16.mxu0 %v3082_v58 }
 0x104   :  { %1528 = vmatpush1.bf16.msra.mxu0 %v3080_v59 }
 0x105   :  { %1529 = vmatprep.subr.bf16.mxu0 %v3085_v60 }
 0x108   :  { %1530 = vmatpush1.bf16.msra.mxu0 %v3083_v61 }
 0x109   :  { %1531 = vmatprep.subr.bf16.mxu0 %v3088_v62 }
 0x10c   :  { %1532 = vmatpush1.bf16.msra.mxu0 %v3086_v63  ;;  %v3151_v63 = vld [vmem:[#allocation4 + $0xe4] ss:$8 sps:$4 sm:$0xff]  }
 0x10d   :  { %1533 = vmatprep.subr.bf16.mxu0 %v3091_v0  ;;  %v3149_v0 = vld [vmem:[#allocation4 + $0xe0] ss:$8 sps:$4 sm:$0xff]  }
 0x110   :  { %1534 = vmatpush1.bf16.msra.mxu0 %v3089_v1  ;;  %v3154_v1 = vld [vmem:[#allocation4 + $0xf4] ss:$8 sps:$4 sm:$0xff]  }
 0x111   :  { %1535 = vmatprep.subr.bf16.mxu0 %v3094_v2  ;;  %v3152_v2 = vld [vmem:[#allocation4 + $0xf0] ss:$8 sps:$4 sm:$0xff]  }
 0x114   :  { %1536 = vmatpush1.bf16.msra.mxu0 %v3092_v3  ;;  %v3157_v3 = vld [vmem:[#allocation4 + $0x104] ss:$8 sps:$4 sm:$0xff]  }
 0x115   :  { %1537 = vmatprep.subr.bf16.mxu0 %v3097_v4 }
 0x118   :  { %1538 = vmatpush1.bf16.msra.mxu0 %v3095_v5 }
 0x119   :  { %1539 = vmatprep.subr.bf16.mxu0 %v3100_v6 }
 0x11c   :  { %1540 = vmatpush1.bf16.msra.mxu0 %v3098_v7 }
 0x11d   :  { %1541 = vmatprep.subr.bf16.mxu0 %v3103_v8 }
 0x11f   :  { %v2691_v27 = vpop.f32.mrb[0].mxu1 }
 0x120   :  { %1542 = vmatpush1.bf16.msra.mxu0 %v3101_v11  ;;  %v2692_v29 = vpop.f32.mrb[1].mxu1  ;;  %v329_v11 = vsub.s32 1, %v3368_v42  ;;  %v3202_v42 = vld [vmem:[%s3475_s7 + $0x38] sm:$0xff]  }
 0x121   :  { %1543 = vmatprep.subr.bf16.mxu0 %v3106_v13  ;;  %v2693_v30 = vadd.f32 %v2692_v29, %v2691_v27  ;;  %v2694_v31 = vpop.f32.mrb[2].mxu1  ;;  %v3158_v27 = vld [vmem:[#allocation4 + $0x110] ss:$8 sps:$4 sm:$0xff]   ;;  %v3163_v29 = vld [vmem:[#allocation4 + $0x124] ss:$8 sps:$4 sm:$0xff]  }
 0x122   :  { %v2695_v32 = vpop.f32.mrb[3].mxu1  ;;  %v330_v13 = vrot.slane %v321_v47, %v329_v11  ;;  %v3166_v31 = vld [vmem:[#allocation4 + $0x134] ss:$8 sps:$4 sm:$0xff]  }
 0x123   :  { %v1589_v50 = vadd.f32 %v2693_v30, %v334_v49  ;;  %v3161_v30 = vld [vmem:[#allocation4 + $0x120] ss:$8 sps:$4 sm:$0xff]   ;;  %v3164_v32 = vld [vmem:[#allocation4 + $0x130] ss:$8 sps:$4 sm:$0xff]  }
 0x124   :  { %1544 = vmatpush1.bf16.msra.mxu0 %v3104_v16  ;;  %v3183_v47 = vld [vmem:[%s3473_s5 + $0x50] sm:$0xff]   ;;  %v3185_v49 = vld [vmem:[%s3473_s5 + $0x58] sm:$0xff]  }
 0x127   :  { %1546 = vmatmul.mubr.bf16.vlgmr.msra.gmra.mrb[0].mxu0 %v3362_v26  ;;  %v3128_v26 = vld [vmem:[#allocation4 + $0x70] ss:$8 sps:$4 sm:$0xff]  }
 0x128   :  { %2035 = vmatpush1.bf16.msra.mxu1 %v3128_v26  ;;  %v3169_v26 = vld [vmem:[#allocation4 + $0x144] ss:$8 sps:$4 sm:$0xff]  }
 0x129   :  { %2036 = vmatprep.subr.bf16.mxu1 %v3133_v33  ;;  %v3167_v33 = vld [vmem:[#allocation4 + $0x140] ss:$8 sps:$4 sm:$0xff]  }
 0x12c   :  { %2037 = vmatpush1.bf16.msra.mxu1 %v3131_v34  ;;  %v3172_v34 = vld [vmem:[#allocation4 + $0x154] ss:$8 sps:$4 sm:$0xff]  }
 0x12d   :  { %2038 = vmatprep.subr.bf16.mxu1 %v3136_v35  ;;  %v3170_v35 = vld [vmem:[#allocation4 + $0x150] ss:$8 sps:$4 sm:$0xff]  }
 0x130   :  { %2039 = vmatpush1.bf16.msra.mxu1 %v3134_v36  ;;  %v3175_v36 = vld [vmem:[#allocation4 + $0x164] ss:$8 sps:$4 sm:$0xff]  }
 0x131   :  { %2040 = vmatprep.subr.bf16.mxu1 %v3139_v37  ;;  %v3173_v37 = vld [vmem:[#allocation4 + $0x160] ss:$8 sps:$4 sm:$0xff]  }
 0x134   :  { %2041 = vmatpush1.bf16.msra.mxu1 %v3137_v38  ;;  %v3178_v38 = vld [vmem:[#allocation4 + $0x174] ss:$8 sps:$4 sm:$0xff]  }
 0x135   :  { %2042 = vmatprep.subr.bf16.mxu1 %v3142_v40 }
 0x138   :  { %2043 = vmatpush1.bf16.msra.mxu1 %v3140_v41  ;;  %v3179_v41 = vld [vmem:[%s3473_s5 + $0x40] sm:$0xff]  }
 0x139   :  { %2044 = vmatprep.subr.bf16.mxu1 %v3145_v43  ;;  %v3180_v43 = vld [vmem:[%s3473_s5] sm:$0xff]  }
 0x13c   :  { %2045 = vmatpush1.bf16.msra.mxu1 %v3143_v44 }
 0x13d   :  { %2046 = vmatprep.subr.bf16.mxu1 %v3148_v46  ;;  %v3182_v46 = vld [vmem:[%s3473_s5 + $0x8] sm:$0xff]  }
 0x13f   :  { %v2713_v51 = vpop.f32.mrb[4].mxu1 }
 0x140   :  { %2047 = vmatpush1.bf16.msra.mxu1 %v3146_v48  ;;  %v2714_v52 = vpop.f32.mrb[5].mxu1  ;;  %v3184_v48 = vld [vmem:[%s3473_s5 + $0x10] sm:$0xff]  }
 0x141   :  { %v2715_v53 = vadd.f32 %v2714_v52, %v2713_v51  ;;  %v2716_v54 = vpop.f32.mrb[6].mxu1  ;;  %2048 = vmatprep.subr.bf16.mxu1 %v3151_v63  ;;  %v3187_v51 = vld [vmem:[%s3473_s5 + $0x60] sm:$0xff]   ;;  %v3198_v63 = vld [vmem:[%s3475_s7 + $0x18] sm:$0xff]  }
 0x142   :  { %v2717_v55 = vpop.f32.mrb[7].mxu1  ;;  %v3188_v52 = vld [vmem:[%s3473_s5 + $0x20] sm:$0xff]   ;;  %v3190_v54 = vld [vmem:[%s3473_s5 + $0x28] sm:$0xff]  }
 0x143   :  { %v1629_v56 = vadd.f32 %v2715_v53, %v1589_v50  ;;  %v3186_v50 = vld [vmem:[%s3473_s5 + $0x18] sm:$0xff]   ;;  %v3189_v53 = vld [vmem:[%s3473_s5 + $0x68] sm:$0xff]   ;;  %v3191_v55 = vld [vmem:[%s3473_s5 + $0x70] sm:$0xff]  }
 0x144   :  { %2049 = vmatpush1.bf16.msra.mxu1 %v3149_v0  ;;  %v3199_v0 = vld [vmem:[%s3475_s7 + $0x20] sm:$0xff]  }
 0x145   :  { %2050 = vmatprep.subr.bf16.mxu1 %v3154_v1  ;;  %v3200_v1 = vld [vmem:[%s3475_s7 + $0x28] sm:$0xff]  }
 0x148   :  { %2051 = vmatpush1.bf16.msra.mxu1 %v3152_v2  ;;  %v1768_v2 = vld [vmem:[%s3472_s4] sm:$0x3] }
 0x149   :  { %2061 = vmatprep.subr.bf16.mxu1 %v3157_v3  ;;  %v1773_v3 = vrot.slane %v1768_v2, %v325_v10 }
 0x15f   :  { %v2735_v57 = vpop.f32.mrb[8].mxu1 }
 0x160   :  { %v2736_v58 = vpop.f32.mrb[9].mxu1 }
 0x161   :  { %v2737_v59 = vadd.f32 %v2736_v58, %v2735_v57  ;;  %v2738_v60 = vpop.f32.mrb[10].mxu1  ;;  %v3193_v57 = vld [vmem:[%s3473_s5 + $0x78] sm:$0xff]  }
 0x162   :  { %v2739_v61 = vpop.f32.mrb[11].mxu1  ;;  %v3194_v58 = vld [vmem:[%s3473_s5 + $0x38] sm:$0xff]   ;;  %v3258_v60 = vmov 0.0  }
 0x163   :  { %v1669_v62 = vadd.f32 %v2737_v59, %v1629_v56  ;;  %v3192_v56 = vld [vmem:[%s3473_s5 + $0x30] sm:$0xff]   ;;  %v3195_v59 = vld [vmem:[%s3475_s7] sm:$0xff]   ;;  %2794 = vmatprep.subr.bf16.mxu0 %v3258_v60  ;;  %v3196_v61 = vld [vmem:[%s3475_s7 + $0x8] sm:$0xff]   ;;  %2810 = vmatprep.mubr.msk.bf16.mxu0 %vm3259_vm0, %v3258_v60 }
 0x164   :  { %2795 = vmatpush3.bf16.msra.mxu0 %v3195_v59 }
 0x165   :  { %2796 = vmatprep.subr.bf16.mxu0 %v3258_v60 }
 0x168   :  { %2797 = vmatpush3.bf16.msra.mxu0 %v3196_v61 }
 0x169   :  { %2798 = vmatprep.subr.bf16.mxu0 %v3258_v60 }
 0x17f   :  { %v2757_v4 = vpop.f32.mrb[12].mxu1 }
 0x180   :  { %v2758_v5 = vpop.f32.mrb[13].mxu1 }
 0x181   :  { %v2759_v6 = vadd.f32 %v2758_v5, %v2757_v4  ;;  %v2760_v7 = vpop.f32.mrb[14].mxu1  ;;  %v1777_v4 = vrot.slane %v1768_v2, %v329_v11  ;;  %v2649_v11 = vld [vmem:[%s3474_s6] ss:$0 sm:$0xff] }
 0x182   :  { %v2761_v8 = vpop.f32.mrb[15].mxu1 }
 0x183   :  { %v1709_v9 = vadd.f32 %v2759_v6, %v1669_v62  ;;  %v3197_v62 = vld [vmem:[%s3475_s7 + $0x10] sm:$0xff]  }
 0x184   :  { %2799 = vmatpush3.bf16.msra.mxu0 %v3197_v62 }
 0x185   :  { %v1716_v40 = vmax.f32 %v1709_v9, 0.0  ;;  %2800 = vmatprep.subr.bf16.mxu0 %v3258_v60 }
 0x187   :  { %v1719_v44 = vpack.c.bf16 %v1716_v40, %v1716_v40 }
 0x188   :  { %2801 = vmatpush3.bf16.msra.mxu0 %v3198_v63 }
 0x189   :  { %2802 = vmatprep.subr.bf16.mxu0 %v3258_v60 }
 0x18c   :  { %2803 = vmatpush3.bf16.msra.mxu0 %v3199_v0 }
 0x18d   :  { %2804 = vmatprep.subr.bf16.mxu0 %v3258_v60 }
 0x190   :  { %2805 = vmatpush3.bf16.msra.mxu0 %v3200_v1 }
 0x191   :  { %2806 = vmatprep.subr.bf16.mxu0 %v3258_v60 }
 0x1fa   :  { %v1547_v14 = vpop.f32.mrb[0].mxu0 }
 0x1fb   :  { %v2814_v15 = vadd.f32 %v1547_v14, %v326_v12  ;;  %v1549_v16 = vpop.f32.mrb[1].mxu0 }
 0x1fc   :  { %v2815_v17 = vadd.f32 %v1549_v16, %v330_v13  ;;  %v1551_v18 = vpop.f32.mrb[2].mxu0 }
 0x1fd   :  { %v1714_v19 = vmax.f32 %v2814_v15, 0.0  ;;  %v1552_v20 = vpop.f32.mrb[3].mxu0 }
 0x1fe   :  { %v1715_v21 = vmax.f32 %v2815_v17, 0.0  ;;  %v3201_v17 = vld [vmem:[%s3475_s7 + $0x30] sm:$0xff]  }
 0x1ff   :  { %v1717_v24 = vpack.c.bf16 %v1714_v19, %v1714_v19  ;;  %2807 = vmatpush3.bf16.msra.mxu0 %v3201_v17 }
 0x200   :  { %v1718_v22 = vpack.c.bf16 %v1715_v21, %v1715_v21  ;;  %2808 = vmatprep.subr.bf16.mxu0 %v3258_v60 }
 0x202   :  { %2052 = vmatprep.mubr.bf16.mxu1 %v1718_v22 }
 0x203   :  { %2053 = vmatmul.mubr.bf16.vlgmr.msra.gmra.mrb[16].mxu1 %v1717_v24  ;;  %2809 = vmatpush3.bf16.msra.mxu0 %v3202_v42 }
 0x204   :  { %2062 = vmatpush1.bf16.msra.mxu1 %v3155_v23  ;;  %2093 = vmatprep.mubr.bf16.mxu1 %v3257_v28 }
 0x205   :  { %2063 = vmatprep.subr.bf16.mxu1 %v3160_v25  ;;  %v2666_v25 = vld [vmem:[%s3476_s8] ss:$0 sm:$0xff] }
 0x208   :  { %2064 = vmatpush1.bf16.msra.mxu1 %v3158_v27 }
 0x209   :  { %2065 = vmatprep.subr.bf16.mxu1 %v3163_v29 }
 0x20c   :  { %2066 = vmatpush1.bf16.msra.mxu1 %v3161_v30 }
 0x20d   :  { %2067 = vmatprep.subr.bf16.mxu1 %v3166_v31 }
 0x210   :  { %2068 = vmatpush1.bf16.msra.mxu1 %v3164_v32 }
 0x211   :  { %2069 = vmatprep.subr.bf16.mxu1 %v3169_v26 }
 0x214   :  { %2070 = vmatpush1.bf16.msra.mxu1 %v3167_v33 }
 0x215   :  { %2071 = vmatprep.subr.bf16.mxu1 %v3172_v34 }
 0x218   :  { %2072 = vmatpush1.bf16.msra.mxu1 %v3170_v35 }
 0x219   :  { %2073 = vmatprep.subr.bf16.mxu1 %v3175_v36 }
 0x21c   :  { %2074 = vmatpush1.bf16.msra.mxu1 %v3173_v37 }
 0x21d   :  { %2075 = vmatprep.subr.bf16.mxu1 %v3178_v38 }
 0x220   :  { %2076 = vmatpush1.bf16.msra.mxu1 %v3176_v39 }
 0x221   :  { %2763 = vmatprep.subr.bf16.mxu1 %v3179_v41 }
 0x223   :  { %2094 = vmatmul.mubr.bf16.vlgmr.msra.gmra.mrb[16].mxu1 %v1719_v44 }
 0x224   :  { %2764 = vmatpush3.bf16.msra.mxu1 %v3180_v43 }
 0x225   :  { %2765 = vmatprep.subr.bf16.mxu1 %v3181_v45 }
 0x228   :  { %2766 = vmatpush3.bf16.msra.mxu1 %v3182_v46 }
 0x229   :  { %2767 = vmatprep.subr.bf16.mxu1 %v3183_v47 }
 0x22c   :  { %2768 = vmatpush3.bf16.msra.mxu1 %v3184_v48 }
 0x22d   :  { %2769 = vmatprep.subr.bf16.mxu1 %v3185_v49 }
 0x230   :  { %2770 = vmatpush3.bf16.msra.mxu1 %v3186_v50 }
 0x231   :  { %2771 = vmatprep.subr.bf16.mxu1 %v3187_v51 }
 0x234   :  { %2772 = vmatpush3.bf16.msra.mxu1 %v3188_v52 }
 0x235   :  { %2773 = vmatprep.subr.bf16.mxu1 %v3189_v53 }
 0x238   :  { %2774 = vmatpush3.bf16.msra.mxu1 %v3190_v54 }
 0x239   :  { %2775 = vmatprep.subr.bf16.mxu1 %v3191_v55 }
 0x23c   :  { %2776 = vmatpush3.bf16.msra.mxu1 %v3192_v56 }
 0x23d   :  { %2777 = vmatprep.subr.bf16.mxu1 %v3193_v57 }
 0x240   :  { %2778 = vmatpush3.bf16.msra.mxu1 %v3194_v58 }
 0x2f6   :  { %v2095_v5 = vpop.f32.mrb[16].mxu1 }
 0x2f7   :  { %v2816_v6 = vadd.f32 %v2095_v5, %v1773_v3  ;;  %v2097_v7 = vpop.f32.mrb[17].mxu1 }
 0x2f8   :  { %v2817_v8 = vadd.f32 %v2097_v7, %v1777_v4  ;;  %v2099_v9 = vpop.f32.mrb[18].mxu1 }
 0x2f9   :  { %v2102_v12 = vmax.f32 %v2816_v6, 0.0  ;;  %v2100_v13 = vpop.f32.mrb[19].mxu1 }
 0x2fa   :  { %v2103_v14 = vmax.f32 %v2817_v8, 0.0 }
 0x2fb   :  { %v2104_v16 = vpack.c.bf16 %v2102_v12, %v2102_v12 }
 0x2fc   :  { %v2105_v15 = vpack.c.bf16 %v2103_v14, %v2103_v14 }
 0x2fe   :  { %2273 = vmatprep.mubr.bf16.mxu1 %v2105_v15 }
 0x2ff   :  { %2274 = vmatmul.mubr.bf16.vlgmr.msra.gmra.mrb[20].mxu1 %v2104_v16 }
 0x3d2   :  { %v2779_v10 = vpop.f32.mrb[20].mxu1 }
 0x3d3   :  { %v2780_v18 = vpop.f32.mrb[21].mxu1 }
 0x3d4   :  { %v2781_v19 = vadd.f32 %v2780_v18, %v2779_v10  ;;  %v2782_v20 = vpop.f32.mrb[22].mxu1 }
 0x3d5   :  { %v2783_v21 = vpop.f32.mrb[23].mxu1 }
 0x3d6   :  { %v2276_v22 = vadd.f32 %v2781_v19, %v2649_v11 }
 0x3d8   :  { %v2281_v23 = vmax.f32 %v2276_v22, 0.0 }
 0x3da   :  { %v2282_v24 = vpack.c.bf16 %v2281_v23, %v2281_v23 }
 0x3dc   :  { %2811 = vmatmul.mubr.bf16.vlgmr.msra.gmra.mrb[4].mxu0 %v2282_v24 }
 0x4af   :  { %v2388_v27 = vpop.f32.mrb[4].mxu0 }
 0x4b0   :  { %v2389_v28 = vadd.f32 %v2666_v25, %v2388_v27  ;;  %v2812_v29 = vpop.f32.mrb[5].mxu0 }
 0x4b1   :  { %v2391_v30 = vpop.f32.mrb[6].mxu0 }
 0x4b2   :  { %2394 = vst [vmem:[%s3477_s9] sm:$0xff] %v2389_v28  ;;  %v2813_v31 = vpop.f32.mrb[7].mxu0 }
 0x4b3   :  { %2399 = vsyncpa [#allocation3], 1 }
 0x4b4   :  { %2400 = vsyncpa [#allocation5], 1 }

</bundles_post_ra>
